<compile_context>
chip_gen: v7x
topology: tpu7x:2x2x1
jax: 0.10.0
libtpu: 0.0.40
codegen_flags: <defaults>
</compile_context>

<pallas_src>
import functools

import jax
import jax.numpy as jnp
from jax.experimental import pallas as pl
from jax.experimental.pallas import tpu as pltpu


# ----------------------------------------------------------------------------
# Kernels
# ----------------------------------------------------------------------------

def _adafrn_fused_kernel(x_ref, gain_ref, tau_ref, o_ref, *, eps, inv_hw,
                         f32_epilogue):
    """Single-pass: one (batch, channel-tile) block holds the whole spatial axis.

    x_ref:    (1, TC, HWp)  input tile, native dtype (HWp lane-padded with zeros)
    gain_ref: (1, TC, 1)    precomputed (1 + gamma), f32
    tau_ref:  (1, TC, 1)    learned threshold, f32
    o_ref:    (1, TC, HWp)  output tile, native dtype
    """
    x = x_ref[...]
    xf = x.astype(jnp.float32)
    # Zero-padded lanes contribute 0 to the sum; divide by the *true* HW count.
    ssq = jnp.sum(xf * xf, axis=-1, keepdims=True)                 # (1, TC, 1) f32
    # rsqrt lowers to the EUP slot; fold norm and (1+gamma) into one scale.
    scale = jax.lax.rsqrt(ssq * inv_hw + eps) * gain_ref[...]      # (1, TC, 1) f32
    if f32_epilogue:
        out = jnp.maximum(xf * scale, tau_ref[...])
    else:
        # 16-bit epilogue: avoids full-tile f32 temporaries (halves VMEM/VALU
        # pressure on v6e/v7x bf16 VALU; still correct, if slower, on v5e).
        out = jnp.maximum(x * scale.astype(x.dtype), tau_ref[...].astype(x.dtype))
    o_ref[...] = out.astype(o_ref.dtype)


def _ssq_kernel(x_ref, ssq_ref):
    """Two-pass, pass A: accumulate per-(b, c) sum of squares over spatial tiles.

    Output block index is constant across the last ("arbitrary") grid axis, so the
    (1, TC, 1) accumulator stays resident in VMEM across spatial steps.
    """
    @pl.when(pl.program_id(2) == 0)
    def _():
        ssq_ref[...] = jnp.zeros_like(ssq_ref)
    xf = x_ref[...].astype(jnp.float32)
    ssq_ref[...] += jnp.sum(xf * xf, axis=-1, keepdims=True)


def _scale_kernel(x_ref, ssq_ref, gain_ref, tau_ref, o_ref, *, eps, inv_hw,
                  f32_epilogue):
    """Two-pass, pass B: normalize + (1+gamma) gain + tau threshold on a spatial tile."""
    scale = jax.lax.rsqrt(ssq_ref[...] * inv_hw + eps) * gain_ref[...]
    x = x_ref[...]
    if f32_epilogue:
        out = jnp.maximum(x.astype(jnp.float32) * scale, tau_ref[...])
    else:
        out = jnp.maximum(x * scale.astype(x.dtype), tau_ref[...].astype(x.dtype))
    o_ref[...] = out.astype(o_ref.dtype)


# ----------------------------------------------------------------------------
# Tiling / VMEM budgeting
# ----------------------------------------------------------------------------

def _round_up(v, m):
    return (v + m - 1) // m * m


def _vmem_limit_bytes():
    """Scoped-VMEM limit ~= half of physical VMEM (64 MiB v5e/v6e, 32 MiB v7x)."""
    cap = None
    try:
        info = pltpu.get_tpu_info()
        cap = int(getattr(info, "vmem_capacity_bytes", 0)) or None
    except Exception:
        cap = None
    if cap is None:
        cap = 64 << 20  # be conservative (v7x per-TC VMEM) if the query fails
    return int(max(min(cap // 2, 96 << 20), 16 << 20))


def _pick_tiling(B, C, hw128, itemsize, vmem_limit, forced_spatial_block=None):
    """Returns (TC, L): channel tile and spatial (lane) tile.  L=None => single pass."""
    sub = 8 * max(1, 4 // itemsize)          # sublane packing: 8 f32, 16 bf16, 32 int8
    budget = int(vmem_limit * 0.6)           # headroom for compiler scratch / pipeline
    # Per-block VMEM footprint model:
    #   2x input + 2x output double-buffers (native dtype)
    #   + ~3 full-tile f32 temporaries created inside the kernel.
    per_elem = 4 * itemsize + 3 * 4
    max_elems = max(budget // per_elem, 8 * 128)
    max_elems = min(max_elems, (4 << 20) // itemsize)   # native-block sweet spot

    tc_min = C if C <= sub else sub
    if forced_spatial_block is None and tc_min * hw128 <= max_elems:
        # Single pass: whole (padded) spatial axis per block.
        tc = min(C, max_elems // hw128)
        if tc < C:
            tc = max((tc // sub) * sub, sub)
        # Megacore / pipelining heuristic: make sure there are a few grid steps
        # (v7x has 2 TensorCores; a 1-2 step grid leaves a core idle).
        while B * pl.cdiv(C, tc) < 4 and tc >= 2 * sub:
            tc = max(((tc // 2) // sub) * sub, sub)
        return tc, None

    # Two-pass path: tile the spatial axis as well.
    tc = tc_min
    if forced_spatial_block is not None:
        L = max(_round_up(int(forced_spatial_block), 128), 128)
    else:
        L = max(((max_elems // max(tc, 1)) // 128) * 128, 128)
    L = min(L, hw128)
    return tc, L


# ----------------------------------------------------------------------------
# Forward wrapper
# ----------------------------------------------------------------------------

def adafrn_forward(x_nchw, s, w, b, tau, eps=1e-05, *, spatial_block=None):
    """AdaFRN forward.

    x_nchw: (B, C, H, W); s: (B, style_dim); w: (style_dim, 2C) (Linear weight,
    already transposed); b: (2C,); tau: (1, C, 1, 1).  Returns (B, C, H, W) in
    x's dtype.  `spatial_block` (multiple of 128) forces the spatially-tiled
    two-pass path (mostly for testing / very large H*W).
    """
    B, C, H, W = x_nchw.shape
    HW = H * W
    dtype = x_nchw.dtype
    itemsize = jnp.dtype(dtype).itemsize

    # Tiny style projection hoisted to XLA.  Only the gamma half is used — beta
    # from the PyTorch module is computed but never applied to the output.
    gamma = (jnp.dot(s.astype(jnp.float32), w[:, :C].astype(jnp.float32))
             + b[:C].astype(jnp.float32))                        # (B, C)
    gain = (1.0 + gamma).reshape(B, C, 1)                        # (B, C, 1) f32
    tau3 = tau.reshape(1, C, 1).astype(jnp.float32)              # (1, C, 1) f32

    vmem_limit = _vmem_limit_bytes()
    hw128 = _round_up(HW, 128)
    TC, L = _pick_tiling(B, C, hw128, itemsize, vmem_limit, spatial_block)

    # Lane-dense layout: zero-pad the spatial axis up to a multiple of 128 (and of
    # the spatial tile L in the two-pass case).  Zeros contribute nothing to the
    # sum-of-squares; the mean divides by the true HW.
    hw_pad = hw128 if L is None else _round_up(hw128, L)
    x = x_nchw.reshape(B, C, HW)
    if hw_pad != HW:
        x = jnp.pad(x, ((0, 0), (0, 0), (0, hw_pad - HW)))

    inv_hw = 1.0 / float(HW)
    # 16-bit epilogue avoids full-tile f32 temporaries; f32 inputs keep f32 math.
    f32_epilogue = itemsize >= 4

    n_ct = pl.cdiv(C, TC)

    if L is None:
        # --- Single fused pass: grid over (batch, channel-tiles). ---
        # Note: a partial last channel tile reads padded (uninitialized) rows; the
        # result in those rows is garbage but the writeback is masked and the
        # per-row reduction cannot contaminate valid rows.
        kernel = functools.partial(_adafrn_fused_kernel, eps=eps, inv_hw=inv_hw,
                                   f32_epilogue=f32_epilogue)
        out = pl.pallas_call(
            kernel,
            out_shape=jax.ShapeDtypeStruct((B, C, hw_pad), dtype),
            grid=(B, n_ct),
            in_specs=[
                pl.BlockSpec((1, TC, hw_pad), lambda bi, ci: (bi, ci, 0)),   # x
                pl.BlockSpec((1, TC, 1), lambda bi, ci: (bi, ci, 0)),        # gain
                pl.BlockSpec((1, TC, 1), lambda bi, ci: (0, ci, 0)),         # tau
            ],
            out_specs=pl.BlockSpec((1, TC, hw_pad), lambda bi, ci: (bi, ci, 0)),
            compiler_params=pltpu.CompilerParams(
                dimension_semantics=("parallel", "parallel"),
                vmem_limit_bytes=vmem_limit),
        )(x, gain, tau3)
    else:
        # --- Two-pass path for large H*W: spatial axis tiled in L-lane chunks. ---
        n_st = hw_pad // L
        # Pass A: per-(b, c) sum of squares; spatial reduction axis last ("arbitrary").
        ssq = pl.pallas_call(
            _ssq_kernel,
            out_shape=jax.ShapeDtypeStruct((B, C, 1), jnp.float32),
            grid=(B, n_ct, n_st),
            in_specs=[pl.BlockSpec((1, TC, L), lambda bi, ci, si: (bi, ci, si))],
            out_specs=pl.BlockSpec((1, TC, 1), lambda bi, ci, si: (bi, ci, 0)),
            compiler_params=pltpu.CompilerParams(
                dimension_semantics=("parallel", "parallel", "arbitrary"),
                vmem_limit_bytes=vmem_limit),
        )(x)
        # Pass B: fused scale + threshold on spatial tiles (all axes independent).
        kernel = functools.partial(_scale_kernel, eps=eps, inv_hw=inv_hw,
                                   f32_epilogue=f32_epilogue)
        out = pl.pallas_call(
            kernel,
            out_shape=jax.ShapeDtypeStruct((B, C, hw_pad), dtype),
            grid=(B, n_ct, n_st),
            in_specs=[
                pl.BlockSpec((1, TC, L), lambda bi, ci, si: (bi, ci, si)),   # x
                pl.BlockSpec((1, TC, 1), lambda bi, ci, si: (bi, ci, 0)),    # ssq
                pl.BlockSpec((1, TC, 1), lambda bi, ci, si: (bi, ci, 0)),    # gain
                pl.BlockSpec((1, TC, 1), lambda bi, ci, si: (0, ci, 0)),     # tau
            ],
            out_specs=pl.BlockSpec((1, TC, L), lambda bi, ci, si: (bi, ci, si)),
            compiler_params=pltpu.CompilerParams(
                dimension_semantics=("parallel", "parallel", "parallel"),
                vmem_limit_bytes=vmem_limit),
        )(x, ssq, gain, tau3)

    if hw_pad != HW:
        out = out[:, :, :HW]
    return out.reshape(B, C, H, W)


# ----------------------------------------------------------------------------
# Pure-JAX reference + self-test
# ----------------------------------------------------------------------------

def _reference(x, s, w, b, tau, eps=1e-05):
    xf = x.astype(jnp.float32)
    xn = xf * jax.lax.rsqrt(jnp.mean(xf ** 2, axis=(2, 3), keepdims=True) + eps)
    h = s.astype(jnp.float32) @ w.astype(jnp.float32) + b.astype(jnp.float32)
    C = x.shape[1]
    gamma = h[:, :C][:, :, None, None]
    out = (1.0 + gamma) * xn
    return jnp.maximum(out, tau.astype(jnp.float32)).astype(x.dtype)


if __name__ == "__main__":
    B, C, H, W = 2, 4, 16, 16
    style_dim = 8

    key = jax.random.PRNGKey(0)
    kx, ks, kw, kb = jax.random.split(key, 4)

    x = jax.random.normal(kx, (B, C, H, W), dtype=jnp.float32)
    s = jax.random.normal(ks, (B, style_dim), dtype=jnp.float32)
    # Synthetic Linear(style_dim, 2C) params; tau init = zeros (as in the module).
    w = jax.random.normal(kw, (style_dim, 2 * C), dtype=jnp.float32) * 0.1
    b = jax.random.normal(kb, (2 * C,), dtype=jnp.float32) * 0.1
    tau = jnp.zeros((1, C, 1, 1), dtype=jnp.float32)

    # Main path: single fused pass, HW already a multiple of 128.
    out = jax.block_until_ready(adafrn_forward(x, s, w, b, tau))
    ref = _reference(x, s, w, b, tau)
    assert out.shape == (B, C, H, W)
    assert jnp.allclose(out, ref, atol=1e-5, rtol=1e-5), "mismatch (fused path)"

    # Non-128-multiple spatial size (7x7): exercises the zero-pad + true-HW mean.
    x2 = jax.random.normal(kx, (B, C, 7, 7), dtype=jnp.float32)
    out2 = jax.block_until_ready(adafrn_forward(x2, s, w, b, tau))
    ref2 = _reference(x2, s, w, b, tau)
    assert jnp.allclose(out2, ref2, atol=1e-5, rtol=1e-5), "mismatch (padded path)"

    # Spatially-tiled two-pass path (forced small spatial tile).
    out3 = jax.block_until_ready(adafrn_forward(x, s, w, b, tau, spatial_block=128))
    assert jnp.allclose(out3, ref, atol=1e-5, rtol=1e-5), "mismatch (two-pass path)"

    print("KERNEL_OK")
</pallas_src>

<mosaic_0001>
module attributes {stable_mosaic.version = 11 : i64} {
  func.func @_adafrn_fused_kernel(%arg0: i32, %arg1: i32, %arg2: memref<1x4x256xf32, #tpu.memory_space<vmem>>, %arg3: memref<1x4x1xf32, #tpu.memory_space<vmem>>, %arg4: memref<1x4x1xf32, #tpu.memory_space<vmem>>, %arg5: memref<1x4x256xf32, #tpu.memory_space<vmem>>) attributes {dimension_semantics = [#tpu.dimension_semantics<parallel>, #tpu.dimension_semantics<parallel>], iteration_bounds = array<i64: 2, 1>, scalar_prefetch = 0 : i64, scratch_operands = 0 : i64, tpu.core_type = #tpu.core_type<tc>, window_params = [{transform_indices = @transform_0, window_bounds = array<i64: 1, 4, 256>}, {transform_indices = @transform_1, window_bounds = array<i64: 1, 4, 1>}, {transform_indices = @transform_2, window_bounds = array<i64: 1, 4, 1>}, {transform_indices = @transform_3, window_bounds = array<i64: 1, 4, 256>}]} {
    %c0 = arith.constant 0 : index
    %c0_0 = arith.constant 0 : index
    %c0_1 = arith.constant 0 : index
    %0 = vector.load %arg2[%c0, %c0_0, %c0_1] : memref<1x4x256xf32, #tpu.memory_space<vmem>>, vector<1x4x256xf32>
    %1 = arith.mulf %0, %0 : vector<1x4x256xf32>
    %cst = arith.constant dense<0.000000e+00> : vector<1x4xf32>
    %2 = vector.multi_reduction <add>, %1, %cst [2] : vector<1x4x256xf32> to vector<1x4xf32>
    %3 = vector.shape_cast %2 : vector<1x4xf32> to vector<1x4x1xf32>
    %cst_2 = arith.constant 3.906250e-03 : f32
    %4 = vector.broadcast %cst_2 : f32 to vector<1x4x1xf32>
    %5 = arith.mulf %3, %4 : vector<1x4x1xf32>
    %cst_3 = arith.constant 9.99999974E-6 : f32
    %6 = vector.broadcast %cst_3 : f32 to vector<1x4x1xf32>
    %7 = arith.addf %5, %6 : vector<1x4x1xf32>
    %8 = math.rsqrt %7 : vector<1x4x1xf32>
    %c0_4 = arith.constant 0 : index
    %c0_5 = arith.constant 0 : index
    %c0_6 = arith.constant 0 : index
    %9 = vector.load %arg3[%c0_4, %c0_5, %c0_6] : memref<1x4x1xf32, #tpu.memory_space<vmem>>, vector<1x4x1xf32>
    %10 = arith.mulf %8, %9 : vector<1x4x1xf32>
    %11 = vector.broadcast %10 : vector<1x4x1xf32> to vector<1x4x256xf32>
    %12 = arith.mulf %0, %11 : vector<1x4x256xf32>
    %c0_7 = arith.constant 0 : index
    %c0_8 = arith.constant 0 : index
    %c0_9 = arith.constant 0 : index
    %13 = vector.load %arg4[%c0_7, %c0_8, %c0_9] : memref<1x4x1xf32, #tpu.memory_space<vmem>>, vector<1x4x1xf32>
    %14 = vector.broadcast %13 : vector<1x4x1xf32> to vector<1x4x256xf32>
    %15 = arith.maximumf %12, %14 : vector<1x4x256xf32>
    %c0_10 = arith.constant 0 : index
    %c0_11 = arith.constant 0 : index
    %c0_12 = arith.constant 0 : index
    %16 = vector.load %arg5[%c0_10, %c0_11, %c0_12] : memref<1x4x256xf32, #tpu.memory_space<vmem>>, vector<1x4x256xf32>
    tpu.vector_store %arg5[%c0_10, %c0_11, %c0_12], %15 {strides = array<i32>} : memref<1x4x256xf32, #tpu.memory_space<vmem>>, vector<1x4x256xf32>,
    return
  }
  func.func @transform_0(%arg0: i32, %arg1: i32) -> (i32, i32, i32) {
    %c0_i32 = arith.constant 0 : i32
    %c0_i32_0 = arith.constant 0 : i32
    return %arg0, %arg1, %c0_i32 : i32, i32, i32
  }
  func.func @transform_1(%arg0: i32, %arg1: i32) -> (i32, i32, i32) {
    %c0_i32 = arith.constant 0 : i32
    %c0_i32_0 = arith.constant 0 : i32
    return %arg0, %arg1, %c0_i32 : i32, i32, i32
  }
  func.func @transform_2(%arg0: i32, %arg1: i32) -> (i32, i32, i32) {
    %c0_i32 = arith.constant 0 : i32
    %c0_i32_0 = arith.constant 0 : i32
    %c0_i32_1 = arith.constant 0 : i32
    return %c0_i32, %arg1, %c0_i32_0 : i32, i32, i32
  }
  func.func @transform_3(%arg0: i32, %arg1: i32) -> (i32, i32, i32) {
    %c0_i32 = arith.constant 0 : i32
    %c0_i32_0 = arith.constant 0 : i32
    return %arg0, %arg1, %c0_i32 : i32, i32, i32
  }
}

</mosaic_0001>

<bundles_post_ra>
// kernel: tpu_custom_call.1
= control target key start
LH: loop header
LB: loop body
LE: loop exit
PB: predicated region body
PF: predicated region fallthrough
CT: control target
= control target key end

     0   :  { %8 = vsyncpa [#allocation3], 0  ;;  %s834_s0 = inlined_call_operand.hbm [shape: f32[2,4,256], index: 0, kind: input, shape index: {}]   ;;  %s835_s1 = inlined_call_operand.vmem [shape: f32[2,4,1], index: 1, kind: input, shape index: {}]   ;;  %s836_s2 = inlined_call_operand.vmem [shape: f32[1,4,1], index: 2, kind: input, shape index: {}]   ;;  %s837_s3 = inlined_call_operand.hbm [shape: f32[2,4,256], index: 3, kind: output, shape index: {}]  }
   0x1   :  { %10 = vsyncpa [#allocation3 + $0x1], 0 }
   0x2   :  { %11 = vsyncpa [#allocation4], 0 }
   0x3   :  { %13 = vsyncpa [#allocation4 + $0x1], 0  ;;  %s650_s12 = smov 0   ;;  %s652_s13 = smov 0  }
   0x4   :  { %s654_s14 = smov 0   ;;  %s656_s15 = smov 0  }
   0x5   :  { %s658_s16 = smov 0   ;;  %s660_s17 = smov 0  }
   0x6 LB: > { %s425_s18 = sadd.s32 4294967295, %s624_s17   ;;  %s426_s19 = sadd.s32 4294967294, %s624_s17   ;;  %s624_s17 = sphi %s660_s17, %s19_s17   ;;  %s620_s16 = sphi %s658_s16, %s853_s16   ;;  %s616_s15 = sphi %s656_s15, %s852_s15   ;;  %s612_s14 = sphi %s654_s14, %s851_s14   ;;  %s608_s13 = sphi %s652_s13, %s850_s13   ;;  %s604_s12 = sphi %s650_s12, %s849_s12  }
   0x7   : > { %s31_s20 = sadd.s32 1, %s620_s16  ;;  %s40_s21 = sadd.s32 1, %s612_s14 }
   0x8   : > { %p33_p0 = scmp.ge.s32.totalorder %s31_s20, 2  ;;  %p47_p1 = scmp.ne.s32.totalorder %s612_s14, %s608_s13 }
   0x9   : > { %p48_p2 = scmp.eq.s32.totalorder %s624_s17, 0  ;;  %p53_p3 = scmp.ne.s32.totalorder %s608_s13, %s604_s12 }
   0xa   : > { %s855_s20 = smov (%p33_p0, %s31_s20), 0  ;;  %p54_p5 = scmp.eq.s32.totalorder %s425_s18, 0 }
   0xb   : > { %p691_p4 = por %p48_p2, %p47_p1  ;;  %s35_s23 = ssub.s32 %s620_s16, %s855_s20 }
   0xc   : > { %p133_p6 = scmp.eq.s32.totalorder %s425_s18, 1  ;;  %p38_p7 = scmp.eq.s32.totalorder %s35_s23, 0 }
   0xd   : > { %p697_p8 = por %p54_p5, %p53_p3  ;;  %p139_p10 = scmp.eq.s32.totalorder %s426_s19, 1 }
   0xe   : > { %p701_p9 = por %p133_p6, %p47_p1  ;;  %p456_p13 = scmp.lt.s32.totalorder %s624_s17, 2 }
   0xf   : > { %s706_s26 = scalar_select %p38_p7, %s612_s14, %s40_s21  }
  0x10   : > { %s841_s25 = scalar_select %p701_p9, 1, 0 }
  0x11   : > { %p708_p11 = por %p139_p10, %p53_p3  ;;  %s166_s28 = sand.u32 1, %s612_s14  }
  0x12   : > { %s430_s29 = sshll.u32 %s166_s28, 3  ;;  %s442_s30 = sshll.u32 %s620_s16, 7 }
  0x13   : > { %s842_s27 = scalar_select %p708_p11, 1, 0 }
  0x14   : > { %s719_s6 = scalar_lea.hbm %s834_s0, %s442_s30  ;;  %s170_s7 = scalar_lea.vmem [#allocation2], %s430_s29 }
  0x15   : > { %s180_s8 = sshll.u32 %s170_s7, 4  ;;  %p725_p0 = pnand %p456_p13, %p691_p4  ;;  %s721_s8 = int_to_ptr.vmem [resolvable:$true] %s180_s8 }
  0x16   : > { %s167_s10 = scalar_lea.sflag [#allocation3], %s166_s28  ;;  %s512_s11 = scalar_lea.hbm %s719_s6, 128 }
  0x17   : > { %p513_p3 = scmp.ne.s32.totalorder %s719_s6, %s512_s11  ;;  %p514_p5 = pneg %p725_p0 }
  0x18   : > { %s517_s21 = scalar_lea.hbm %s834_s0, 256  ;;  %p518_p4 = scmp.lt.u32.totalorder %s719_s6, %s834_s0 }
  0x19   : > { %p515_p6 = pnand %p514_p5, %p513_p3  ;;  %p519_p10 = scmp.lt.u32.totalorder %s517_s21, %s512_s11 }
  0x1a   : > { %p521_p12 = scmp.lt.u32.totalorder %s512_s11, %s719_s6 }
  0x1b   : > { %p516_p7 = pneg %p515_p6  ;;  %p520_p13 = por %p519_p10, %p518_p4 }
  0x1d   : > { %p522_p1 = por %p521_p12, %p520_p13 }
  0x1f   : > { %p523_p2 = pnand %p522_p1, %p516_p7 }
  0x21   : > { %526 = shalt.err (!%p523_p2)
}
  0x22   : > { %s527_s28 = scalar_lea.vmem %s721_s8, 128  ;;  %s626_s29 = smov [#allocation2]  }
  0x23   : > { %p528_p3 = scmp.ne.s32.totalorder %s721_s8, %s527_s28  ;;  %s532_s30 = sshll.u32 %s626_s29, 4  ;;  %s533_s30 = int_to_ptr.vmem [resolvable:$false] %s532_s30 }
  0x24   : > { %s534_s4 = scalar_lea.vmem %s533_s30, 256  ;;  %p535_p9 = scmp.lt.s32.totalorder %s721_s8, %s533_s30 }
  0x25   : > { %p530_p6 = pnand %p528_p3, %p514_p5  ;;  %p536_p4 = scmp.lt.s32.totalorder %s534_s4, %s527_s28 }
  0x27   : > { %p531_p11 = pneg %p530_p6  ;;  %p537_p10 = por %p536_p4, %p535_p9 }
  0x29   : > { %p538_p12 = pnand %p537_p10, %p531_p11 }
  0x2b   : > { %541 = shalt.err (!%p538_p12)
}
  0x2c   : > { %451 = dma.hbm_to_vmem [thread:$0]  (!%p725_p0), %s719_s6, 128, %s721_s8, %s167_s10  }
  0x2d   : > { %p844_p1 = scmp.lt.s32.totalorder %s624_s17, 3  ;;  %p845_p2 = scmp.ge.s32.totalorder %s624_s17, 1 }
  0x2f   : > { %p196_p5 = pnand %p845_p2, %p844_p1 }
  0x30   : > { %s761_s5 = sand.u32 (!%p196_p5), 1, %s608_s13  }
  0x31   : > { %199 = sbr.rel (%p196_p5) target bundleno = 372 (0x174), region = 32  ;;  %s434_s7 = sshll.u32 (!%p196_p5), %s761_s5, 3 }
  0x32   : > { %s202_s11 = scalar_lea.sflag (!%p196_p5), [#allocation3], %s761_s5  ;;  %s205_s9 = scalar_lea.vmem (!%p196_p5), [#allocation2], %s434_s7 }
  0x38   : > { %595 = dma.done.wait (%p697_p8), %s202_s11, 128  }
  0x39   : > { %597 = vsyncadd (%p697_p8), %s202_s11, 4294967168  ;;  %v250_v0 = vld [vmem:[%s205_s9] sm:$0xff]  ;;  %vm255_vm0 = vcmask 1043456   ;;  %v627_v6 = vmov 0   ;;  %p239_p9 = scmp.lt.s32.totalorder %s616_s15, 1  ;;  %v273_v16 = vlaneseq  ;;  %s443_s22 = sshll.u32 %s616_s15, 7 }
  0x3a   : > { %v251_v1 = vmul.f32 %v250_v0, %v250_v0  ;;  %508 = vset.pattern.permute.xlu0 %v627_v6  ;;  %509 = vset.pattern.permute.xlu1 %v627_v6  ;;  %v279_v7 = vld [vmem:[%s836_s2] sm:$0xf]  ;;  %v628_v14 = vmov 839922192   ;;  %s238_s23 = scalar_lea.vmem [#allocation5], %s434_s7  ;;  %s785_s4 = scalar_lea.hbm %s837_s3, %s443_s22 }
  0x3b   : > { %282 = vperm.xlu1 %509, %v279_v7   ;;  %s240_s24 = scalar_select %p239_p9, %s616_s15, 1  ;;  %v271_v15 = vunpack.c.l.s4 %v628_v14  ;;  %v274_v18 = vshrl.u32 %v273_v16, 7 }
  0x3c   : > { %v253_v2 = vcombine.high %v251_v1, %v251_v1  ;;  %v256_v3 = vsel %vm255_vm0, %v251_v1, 0.0  ;;  %s311_s28 = sshll.u32 %s238_s23, 4  ;;  %s295_s11 = scalar_lea.sflag [#allocation4], %s761_s5  ;;  %s787_s28 = int_to_ptr.vmem [resolvable:$true] %s311_s28 }
  0x3d   : > { %s436_s10 = sshll.u32 %s240_s24, 2  ;;  %v272_v17 = vunpack.c.0.s8 %v271_v15  ;;  %s542_s9 = scalar_lea.vmem %s787_s28, 128 }
  0x3e   : > { %v257_v4 = vsel %vm255_vm0, %v253_v2, 0.0  ;;  %s245_s21 = scalar_lea.vmem %s835_s1, %s436_s10  ;;  %p543_p8 = scmp.ne.s32.totalorder %s787_s28, %s542_s9 }
  0x3f   : > { %v258_v5 = vadd.f32 %v257_v4, %v256_v3  ;;  %v264_v11 = vld [vmem:[%s245_s21] sm:$0xf]  ;;  %v275_v19 = vsub.s32 %v272_v17, %v274_v18  ;;  %p846_p11 = scmp.ne.s32.totalorder %s841_s25, 0  ;;  %s629_s15 = smov [#allocation5]  }
  0x40   : > { %s546_s7 = sshll.u32 %s629_s15, 4  ;;  %s547_s7 = int_to_ptr.vmem [resolvable:$false] %s546_s7 }
  0x41   : > { %259 = vadd.xlane.f32.xlu0 %v258_v5  ;;  %p544_p0 = pnand %p543_p8, %p846_p11  ;;  %s548_s6 = scalar_lea.vmem %s547_s7, 256 }
  0x42   : > { %p549_p13 = scmp.lt.s32.totalorder %s787_s28, %s547_s7  ;;  %p550_p3 = scmp.lt.s32.totalorder %s548_s6, %s542_s9 }
  0x43   : > { %p545_p7 = pneg %p544_p0 }
  0x44   : > { %p551_p6 = por %p550_p3, %p549_p13 }
  0x46   : > { %p552_p4 = pnand %p551_p6, %p545_p7 }
  0xba   : > { %v283_v20 = vpop.permute.xlu1 %282 }
  0xbb   : > { %v290_v23 = vrot.slane %v283_v20, %v275_v19 }
  0xce   : > { %v260_v8 = vpop.xlane.xlu0 %259 }
  0xcf   : > { %v261_v9 = vmul.f32 0.00390625, %v260_v8 }
  0xd1   : > { %v262_v10 = vadd.f32 1e-05, %v261_v9 }
  0xd3   : > { %510 = vrsqrt.f32 %v262_v10 }
  0xdd   : > { %v511_v12 = vpop.eup %510 }
  0xde   : > { %v265_v13 = vmul.f32 %v511_v12, %v264_v11 }
  0xe0   : > { %268 = vperm.xlu0 %508, %v265_v13  }
 0x15f   : > { %v269_v21 = vpop.permute.xlu0 %268 }
 0x160   : > { %v276_v22 = vrot.slane %v269_v21, %v275_v19 }
 0x162   : > { %v278_v24 = vmul.f32 %v276_v22, %v250_v0 }
 0x164   : > { %v292_v25 = vmax.f32 %v278_v24, %v290_v23 }
 0x166   : > { %293 = vst [vmem:[%s238_s23] sm:$0xff] %v292_v25 }
 0x167   : > { %555 = shalt.err (!%p552_p4)
}
 0x168   : > { %s556_s5 = scalar_lea.hbm %s785_s4, 128  ;;  %s560_s10 = scalar_lea.hbm %s837_s3, 256 }
 0x169   : > { %p557_p10 = scmp.ne.s32.totalorder %s785_s4, %s556_s5  ;;  %p561_p2 = scmp.lt.u32.totalorder %s785_s4, %s837_s3 }
 0x16a   : > { %p562_p5 = scmp.lt.u32.totalorder %s560_s10, %s556_s5  ;;  %p564_p8 = scmp.lt.u32.totalorder %s556_s5, %s785_s4 }
 0x16b   : > { %p558_p12 = pnand %p557_p10, %p846_p11 }
 0x16c   : > { %p563_p9 = por %p562_p5, %p561_p2 }
 0x16d   : > { %p559_p1 = pneg %p558_p12 }
 0x16e   : > { %p565_p0 = por %p564_p8, %p563_p9 }
 0x170   : > { %p566_p7 = pnand %p565_p0, %p559_p1 }
 0x172   : > { %569 = shalt.err (!%p566_p7)
}
 0x173   : > { %446 = dma.vmem_to_hbm [thread:$0]  (%p846_p11), %s787_s28, 128, %s785_s4, %s295_s11  }
 0x174 PF: > { %s323_s21 = sand.u32 1, %s604_s12   ;;  %p847_p13 = scmp.ne.s32.totalorder %s842_s27, 0 }
 0x175   : > { %p848_p3 = scmp.ge.s32.totalorder %s624_s17, 2  ;;  %s324_s22 = scalar_lea.sflag [#allocation4], %s323_s21 }
 0x177   : > { %p453_p6 = pnand %p848_p3, %p847_p13 }
 0x179   : > { %599 = dma.done.wait (!%p453_p6), %s324_s22, 128  }
 0x17a   : > { %601 = vsyncadd (!%p453_p6), %s324_s22, 4294967168  ;;  %s19_s17 = sadd.s32 1, %s624_s17   ;;  %s849_s12 = smov %s608_s13 }
 0x17b   : > { %p16_p4 = scmp.ge.s32.totalorder %s19_s17, 4   ;;  %s850_s13 = smov %s612_s14 }
 0x17c   : > { %s851_s14 = smov %s706_s26  ;;  %s852_s15 = smov %s620_s16 }
 0x17d   : > { %s853_s16 = smov %s855_s20  ;;  %18 = sbr.rel (!%p16_p4) target bundleno = 6 (0x6), region = 83 }
 0x184   :  { %329 = vsyncpa [#allocation3], 1 }
 0x185   :  { %331 = vsyncpa [#allocation3 + $0x1], 1 }
 0x186   :  { %332 = vsyncpa [#allocation4], 1 }
 0x187   :  { %334 = vsyncpa [#allocation4 + $0x1], 1 }

</bundles_post_ra>
